<compile_context>
chip_gen: v5e
topology: v5e:2x2
jax: 0.10.0
libtpu: 0.0.40
codegen_flags: <defaults>
</compile_context>

<pallas_src>
import jax
import jax.numpy as jnp
from jax.experimental import pallas as pl
from jax.experimental.pallas import tpu as pltpu

NEG_SLOPE = 0.01   # F.leaky_relu default negative_slope
BN_EPS = 1e-5      # nn.BatchNorm1d default eps


def _leaky(v):
    return jnp.where(v > 0, v, NEG_SLOPE * v)


def fused_gcn_kernel(adj_ref, x_ref,
                     w1_ref, c1_ref,
                     w2_ref, c2_ref,
                     lw1_ref, lb1_ref, lw2_ref, lb2_ref,
                     out_ref):
    # adj / x / weights are bf16; biases (BN-folded) are f32.
    adj = adj_ref[...]
    cdt = adj.dtype

    # --- GCNConv 1 (BN folded, reordered): ((A_hat @ X) @ W1') + c1, leaky_relu
    ax = jnp.dot(adj, x_ref[...], preferred_element_type=jnp.float32)      # [N, C_in]
    h = jnp.dot(ax.astype(cdt), w1_ref[...],
                preferred_element_type=jnp.float32) + c1_ref[...]
    h = _leaky(h)                                                          # f32 [N, H]

    # --- hidden GCNConv block with residual (num_layers=2 -> exactly one)
    g = jnp.dot(h.astype(cdt), w2_ref[...], preferred_element_type=jnp.float32)
    g = jnp.dot(adj, g.astype(cdt), preferred_element_type=jnp.float32) + c2_ref[...]
    h = _leaky(g + h)

    # --- MLP head: lin1 + leaky_relu, dropout(p=0.3) is identity in eval, lin2
    z = jnp.dot(h.astype(cdt), lw1_ref[...],
                preferred_element_type=jnp.float32) + lb1_ref[...]
    z = _leaky(z)
    out_ref[...] = (jnp.dot(z.astype(cdt), lw2_ref[...],
                            preferred_element_type=jnp.float32)
                    + lb2_ref[...]).astype(out_ref.dtype)


def conv_single_node_forward(adj_hat, x, params, *, compute_dtype=jnp.bfloat16):
    n = x.shape[0]
    c_out = params["lin2_w"].shape[1]

    # Fold eval-mode BatchNorm affine and conv bias into the conv weights/bias.
    #   (A X W + b) * s + t == A X (W * s) + (b * s + t)   (exact, column scale)
    w1 = (params["w1"] * params["bn1_scale"]).astype(compute_dtype)
    c1 = params["b1"] * params["bn1_scale"] + params["bn1_shift"]
    w2 = (params["w2"] * params["bn2_scale"]).astype(compute_dtype)
    c2 = params["b2"] * params["bn2_scale"] + params["bn2_shift"]

    args = (adj_hat.astype(compute_dtype), x.astype(compute_dtype),
            w1, c1, w2, c2,
            params["lin1_w"].astype(compute_dtype), params["lin1_b"],
            params["lin2_w"].astype(compute_dtype), params["lin2_b"])

    # Gridless call: every operand is a single full-extent VMEM block, no
    # pipeline per-step overhead, no double buffering of A_hat.
    # TODO(synk): for large N (dense A_hat > VMEM), switch to per-layer
    # pallas_calls tiled over A_hat row blocks with dimension_semantics
    # ("parallel",) and a K-reduction accumulator; unnecessary at demo size.
    return pl.pallas_call(
        fused_gcn_kernel,
        out_shape=jax.ShapeDtypeStruct((n, c_out), jnp.float32),
        compiler_params=pltpu.CompilerParams(vmem_limit_bytes=32 * 1024 * 1024),
    )(*args)


def build_normalized_adjacency(edge_index, edge_weight, n):
    """A_hat = D^{-1/2} (A + I) D^{-1/2}, matching torch_geometric gcn_norm
    (add_self_loops=True, fill_value=1, weighted degrees)."""
    src, dst = edge_index[0], edge_index[1]
    a = jnp.zeros((n, n), jnp.float32).at[dst, src].add(edge_weight)
    a = a + jnp.eye(n, dtype=jnp.float32)
    deg = a.sum(axis=1)
    dinv = jnp.where(deg > 0, 1.0 / jnp.sqrt(deg), 0.0)
    return dinv[:, None] * a * dinv[None, :]


def init_params(key, c_in, c_hidden, c_out):
    ks = jax.random.split(key, 12)

    def dense(k, fan_in, fan_out):
        return jax.random.normal(k, (fan_in, fan_out), jnp.float32) / jnp.sqrt(fan_in)

    def bn_fold(k, h):
        kg, kb, km, kv = jax.random.split(k, 4)
        gamma = 1.0 + 0.1 * jax.random.normal(kg, (h,), jnp.float32)
        beta = 0.1 * jax.random.normal(kb, (h,), jnp.float32)
        rmean = 0.1 * jax.random.normal(km, (h,), jnp.float32)
        rvar = 1.0 + 0.1 * jax.random.uniform(kv, (h,), jnp.float32)
        scale = gamma / jnp.sqrt(rvar + BN_EPS)
        shift = beta - rmean * scale
        return scale.reshape(1, h), shift.reshape(1, h)

    bn1_s, bn1_t = bn_fold(ks[4], c_hidden)
    bn2_s, bn2_t = bn_fold(ks[5], c_hidden)
    return {
        "w1": dense(ks[0], c_in, c_hidden),
        "b1": (0.01 * jax.random.normal(ks[1], (1, c_hidden), jnp.float32)),
        "w2": dense(ks[2], c_hidden, c_hidden),
        "b2": (0.01 * jax.random.normal(ks[3], (1, c_hidden), jnp.float32)),
        "bn1_scale": bn1_s, "bn1_shift": bn1_t,
        "bn2_scale": bn2_s, "bn2_shift": bn2_t,
        "lin1_w": dense(ks[6], c_hidden, c_hidden),
        "lin1_b": 0.01 * jax.random.normal(ks[7], (1, c_hidden), jnp.float32),
        "lin2_w": dense(ks[8], c_hidden, c_out),
        "lin2_b": 0.01 * jax.random.normal(ks[9], (1, c_out), jnp.float32),
    }


def reference_forward(adj_hat, x, p):
    h = _leaky((adj_hat @ (x @ p["w1"]) + p["b1"]) * p["bn1_scale"] + p["bn1_shift"])
    g = adj_hat @ (h @ p["w2"]) + p["b2"]
    h = _leaky(g * p["bn2_scale"] + p["bn2_shift"] + h)
    h = _leaky(h @ p["lin1_w"] + p["lin1_b"])
    return h @ p["lin2_w"] + p["lin2_b"]


if __name__ == "__main__":
    N, C_IN, C_HIDDEN, C_OUT = 16, 8, 32, 4

    key = jax.random.PRNGKey(0)
    k_x, k_w, k_p = jax.random.split(key, 3)

    # Node features and a symmetric ring graph with random positive edge weights.
    x = jax.random.normal(k_x, (N, C_IN), jnp.float32)
    idx = jnp.arange(N)
    src = jnp.concatenate([idx, (idx + 1) % N])
    dst = jnp.concatenate([(idx + 1) % N, idx])
    edge_index = jnp.stack([src, dst])                      # [2, E], E = 2N
    edge_weight = jax.random.uniform(k_w, (2 * N,), jnp.float32, 0.5, 1.5)

    adj_hat = build_normalized_adjacency(edge_index, edge_weight, N)
    params = init_params(k_p, C_IN, C_HIDDEN, C_OUT)

    out = conv_single_node_forward(adj_hat, x, params)
    out = jax.block_until_ready(out)

    ref = reference_forward(adj_hat, x, params)
    assert out.shape == (N, C_OUT)
    # bf16 operands (f32 accumulation) vs pure-f32 reference -> looser tolerance.
    assert jnp.allclose(out, ref, rtol=5e-2, atol=5e-2), "mismatch vs JAX reference"

    # TODO(synk): dropout(p=0.3) and BatchNorm batch-statistics only differ in
    # training mode; this kernel implements the eval-mode forward pass.
    print("KERNEL_OK")
</pallas_src>

<mosaic_0001>
module attributes {stable_mosaic.version = 11 : i64} {
  func.func @fused_gcn_kernel(%arg0: memref<16x16xbf16, #tpu.memory_space<vmem>>, %arg1: memref<16x8xbf16, #tpu.memory_space<vmem>>, %arg2: memref<8x32xbf16, #tpu.memory_space<vmem>>, %arg3: memref<1x32xf32, #tpu.memory_space<vmem>>, %arg4: memref<32x32xbf16, #tpu.memory_space<vmem>>, %arg5: memref<1x32xf32, #tpu.memory_space<vmem>>, %arg6: memref<32x32xbf16, #tpu.memory_space<vmem>>, %arg7: memref<1x32xf32, #tpu.memory_space<vmem>>, %arg8: memref<32x4xbf16, #tpu.memory_space<vmem>>, %arg9: memref<1x4xf32, #tpu.memory_space<vmem>>, %arg10: memref<16x4xf32, #tpu.memory_space<vmem>>) attributes {dimension_semantics = [], scalar_prefetch = 0 : i64, scratch_operands = 0 : i64, tpu.core_type = #tpu.core_type<tc>} {
    %c0 = arith.constant 0 : index
    %c0_0 = arith.constant 0 : index
    %0 = vector.load %arg0[%c0, %c0_0] : memref<16x16xbf16, #tpu.memory_space<vmem>>, vector<16x16xbf16>
    %c0_1 = arith.constant 0 : index
    %c0_2 = arith.constant 0 : index
    %1 = vector.load %arg1[%c0_1, %c0_2] : memref<16x8xbf16, #tpu.memory_space<vmem>>, vector<16x8xbf16>
    %cst = arith.constant dense<0.000000e+00> : vector<16x8xf32>
    %2 = tpu.matmul %0, %1, %cst {dimension_numbers = #tpu.dot_dimension_numbers<[1], [0], [0], [1], [0, 0, 1, 1], [], []>} : vector<16x16xbf16>, vector<16x8xbf16>, vector<16x8xf32> -> vector<16x8xf32>
    %3 = arith.truncf %2 : vector<16x8xf32> to vector<16x8xbf16>
    %c0_3 = arith.constant 0 : index
    %c0_4 = arith.constant 0 : index
    %4 = vector.load %arg2[%c0_3, %c0_4] : memref<8x32xbf16, #tpu.memory_space<vmem>>, vector<8x32xbf16>
    %cst_5 = arith.constant dense<0.000000e+00> : vector<16x32xf32>
    %5 = tpu.matmul %3, %4, %cst_5 {dimension_numbers = #tpu.dot_dimension_numbers<[1], [0], [0], [1], [0, 0, 1, 1], [], []>} : vector<16x8xbf16>, vector<8x32xbf16>, vector<16x32xf32> -> vector<16x32xf32>
    %c0_6 = arith.constant 0 : index
    %c0_7 = arith.constant 0 : index
    %6 = vector.load %arg3[%c0_6, %c0_7] : memref<1x32xf32, #tpu.memory_space<vmem>>, vector<1x32xf32>
    %7 = vector.broadcast %6 : vector<1x32xf32> to vector<16x32xf32>
    %8 = arith.addf %5, %7 : vector<16x32xf32>
    %cst_8 = arith.constant 0.000000e+00 : f32
    %9 = vector.broadcast %cst_8 : f32 to vector<16x32xf32>
    %10 = arith.cmpf ogt, %8, %9 : vector<16x32xf32>
    %cst_9 = arith.constant 0.00999999977 : f32
    %11 = vector.broadcast %cst_9 : f32 to vector<16x32xf32>
    %12 = arith.mulf %11, %8 : vector<16x32xf32>
    %13 = arith.select %10, %8, %12 : vector<16x32xi1>, vector<16x32xf32>
    %14 = arith.truncf %13 : vector<16x32xf32> to vector<16x32xbf16>
    %c0_10 = arith.constant 0 : index
    %c0_11 = arith.constant 0 : index
    %15 = vector.load %arg4[%c0_10, %c0_11] : memref<32x32xbf16, #tpu.memory_space<vmem>>, vector<32x32xbf16>
    %cst_12 = arith.constant dense<0.000000e+00> : vector<16x32xf32>
    %16 = tpu.matmul %14, %15, %cst_12 {dimension_numbers = #tpu.dot_dimension_numbers<[1], [0], [0], [1], [0, 0, 1, 1], [], []>} : vector<16x32xbf16>, vector<32x32xbf16>, vector<16x32xf32> -> vector<16x32xf32>
    %17 = arith.truncf %16 : vector<16x32xf32> to vector<16x32xbf16>
    %cst_13 = arith.constant dense<0.000000e+00> : vector<16x32xf32>
    %18 = tpu.matmul %0, %17, %cst_13 {dimension_numbers = #tpu.dot_dimension_numbers<[1], [0], [0], [1], [0, 0, 1, 1], [], []>} : vector<16x16xbf16>, vector<16x32xbf16>, vector<16x32xf32> -> vector<16x32xf32>
    %c0_14 = arith.constant 0 : index
    %c0_15 = arith.constant 0 : index
    %19 = vector.load %arg5[%c0_14, %c0_15] : memref<1x32xf32, #tpu.memory_space<vmem>>, vector<1x32xf32>
    %20 = vector.broadcast %19 : vector<1x32xf32> to vector<16x32xf32>
    %21 = arith.addf %18, %20 : vector<16x32xf32>
    %22 = arith.addf %21, %13 : vector<16x32xf32>
    %cst_16 = arith.constant 0.000000e+00 : f32
    %23 = vector.broadcast %cst_16 : f32 to vector<16x32xf32>
    %24 = arith.cmpf ogt, %22, %23 : vector<16x32xf32>
    %cst_17 = arith.constant 0.00999999977 : f32
    %25 = vector.broadcast %cst_17 : f32 to vector<16x32xf32>
    %26 = arith.mulf %25, %22 : vector<16x32xf32>
    %27 = arith.select %24, %22, %26 : vector<16x32xi1>, vector<16x32xf32>
    %28 = arith.truncf %27 : vector<16x32xf32> to vector<16x32xbf16>
    %c0_18 = arith.constant 0 : index
    %c0_19 = arith.constant 0 : index
    %29 = vector.load %arg6[%c0_18, %c0_19] : memref<32x32xbf16, #tpu.memory_space<vmem>>, vector<32x32xbf16>
    %cst_20 = arith.constant dense<0.000000e+00> : vector<16x32xf32>
    %30 = tpu.matmul %28, %29, %cst_20 {dimension_numbers = #tpu.dot_dimension_numbers<[1], [0], [0], [1], [0, 0, 1, 1], [], []>} : vector<16x32xbf16>, vector<32x32xbf16>, vector<16x32xf32> -> vector<16x32xf32>
    %c0_21 = arith.constant 0 : index
    %c0_22 = arith.constant 0 : index
    %31 = vector.load %arg7[%c0_21, %c0_22] : memref<1x32xf32, #tpu.memory_space<vmem>>, vector<1x32xf32>
    %32 = vector.broadcast %31 : vector<1x32xf32> to vector<16x32xf32>
    %33 = arith.addf %30, %32 : vector<16x32xf32>
    %cst_23 = arith.constant 0.000000e+00 : f32
    %34 = vector.broadcast %cst_23 : f32 to vector<16x32xf32>
    %35 = arith.cmpf ogt, %33, %34 : vector<16x32xf32>
    %cst_24 = arith.constant 0.00999999977 : f32
    %36 = vector.broadcast %cst_24 : f32 to vector<16x32xf32>
    %37 = arith.mulf %36, %33 : vector<16x32xf32>
    %38 = arith.select %35, %33, %37 : vector<16x32xi1>, vector<16x32xf32>
    %39 = arith.truncf %38 : vector<16x32xf32> to vector<16x32xbf16>
    %c0_25 = arith.constant 0 : index
    %c0_26 = arith.constant 0 : index
    %40 = vector.load %arg8[%c0_25, %c0_26] : memref<32x4xbf16, #tpu.memory_space<vmem>>, vector<32x4xbf16>
    %cst_27 = arith.constant dense<0.000000e+00> : vector<16x4xf32>
    %41 = tpu.matmul %39, %40, %cst_27 {dimension_numbers = #tpu.dot_dimension_numbers<[1], [0], [0], [1], [0, 0, 1, 1], [], []>} : vector<16x32xbf16>, vector<32x4xbf16>, vector<16x4xf32> -> vector<16x4xf32>
    %c0_28 = arith.constant 0 : index
    %c0_29 = arith.constant 0 : index
    %42 = vector.load %arg9[%c0_28, %c0_29] : memref<1x4xf32, #tpu.memory_space<vmem>>, vector<1x4xf32>
    %43 = vector.broadcast %42 : vector<1x4xf32> to vector<16x4xf32>
    %44 = arith.addf %41, %43 : vector<16x4xf32>
    %c0_30 = arith.constant 0 : index
    %c0_31 = arith.constant 0 : index
    %45 = vector.load %arg10[%c0_30, %c0_31] : memref<16x4xf32, #tpu.memory_space<vmem>>, vector<16x4xf32>
    tpu.vector_store %arg10[%c0_30, %c0_31], %44 {strides = array<i32>} : memref<16x4xf32, #tpu.memory_space<vmem>>, vector<16x4xf32>,
    return
  }
}

</mosaic_0001>

<bundles_post_ra>
// kernel: tpu_custom_call.1
= control target key start
LH: loop header
LB: loop body
LE: loop exit
PB: predicated region body
PF: predicated region fallthrough
CT: control target
= control target key end

     0   :  { %15 = vsyncpa [#allocation3], 0  ;;  %s350_s16 = smov [#allocation2]   ;;  %s351_s18 = smov 64   ;;  %s455_s0 = inlined_call_operand.vmem [shape: bf16[16,16], index: 0, kind: input, shape index: {}]   ;;  %s456_s1 = inlined_call_operand.vmem [shape: bf16[16,8], index: 1, kind: input, shape index: {}]   ;;  %s457_s2 = inlined_call_operand.vmem [shape: bf16[8,32], index: 2, kind: input, shape index: {}]   ;;  %s458_s3 = inlined_call_operand.vmem [shape: f32[1,32], index: 3, kind: input, shape index: {}]   ;;  %s459_s4 = inlined_call_operand.vmem [shape: bf16[32,32], index: 4, kind: input, shape index: {}]   ;;  %s460_s5 = inlined_call_operand.vmem [shape: f32[1,32], index: 5, kind: input, shape index: {}]   ;;  %s461_s6 = inlined_call_operand.hbm [shape: bf16[32,32], index: 6, kind: input, shape index: {}]   ;;  %s462_s7 = inlined_call_operand.vmem [shape: f32[1,32], index: 7, kind: input, shape index: {}]   ;;  %s463_s8 = inlined_call_operand.vmem [shape: bf16[32,4], index: 8, kind: input, shape index: {}]   ;;  %s464_s9 = inlined_call_operand.vmem [shape: f32[1,4], index: 9, kind: input, shape index: {}]   ;;  %s465_s10 = inlined_call_operand.vmem [shape: f32[16,4], index: 10, kind: output, shape index: {}]  }
   0x1   :  { %s32_s15 = sshll.u32 %s461_s6, 4  ;;  %s34_s17 = sshll.u32 %s350_s16, 4  ;;  %s33_s15 = int_to_ptr.hbm [resolvable:$true] %s32_s15  ;;  %s35_s17 = int_to_ptr.vmem [resolvable:$true] %s34_s17 }
   0x2   :  { %s352_s19 = smov 4  }
   0x3   :  { %40 = dma.hbm_to_vmem [thread:$0]  %s33_s15, 256, %s35_s17, [#allocation3], %s351_s18, %s351_s18, %s352_s19  }
   0x4   :  { %348 = dma.done.wait [#allocation3], 256  }
   0x5   :  { %349 = vsyncadd [#allocation3], 4294967040  ;;  %v310_v0 = vld [vmem:[%s456_s1] sm:$0xff]  ;;  %vm67_vm0 = vcmask 130048   ;;  %vm95_vm1 = vcmask 1043456   ;;  %vm91_vm2 = vcmask 64512  }
   0x6   :  { %v309_v1 = vld [vmem:[%s455_s0] sm:$0xff]  ;;  %78 = vmatpush.bf16.msra.mxu0 %v310_v0  ;;  %v312_v7 = vld [vmem:[%s459_s4 + $0x8] sm:$0xff]  ;;  %vm136_vm5 = vcmask 261120   ;;  %vm263_vm10 = vcmask 31744  }
   0x7   :  { %v86_v2 = vld [vmem:[%s457_s2] sm:$0xf]  ;;  %146 = vmatpush.bf16.msra.mxu2 %v312_v7  ;;  %v314_v22 = vld [vmem:[#allocation2 + $0x8] sm:$0xff] }
   0x8   :  { %v97_v3 = vsel %vm95_vm1, %v86_v2, 0  ;;  %v311_v8 = vld [vmem:[%s459_s4] sm:$0xff]  ;;  %v316_v36 = vld [vmem:[%s463_s8 + $0x8] sm:$0xff] }
   0x9   :  { %279 = vmatmul.msk.bf16.vlgmr.msra.gmra.mxu0 %vm67_vm0, %v309_v1  ;;  %106 = vmatpush.bf16.msra.mxu1 %v97_v3  ;;  %v320_v10 = vld [vmem:[%s458_s3] ss:$0 sm:$0xff] }
   0xa   :  { %211 = vmatpush.bf16.msrb.mxu0 %v314_v22  ;;  %v313_v23 = vld [vmem:[#allocation2] sm:$0xff] }
   0xb   :  { %147 = vmatpush.bf16.msra.mxu2 %v311_v8  ;;  %v321_v24 = vld [vmem:[%s460_s5] ss:$0 sm:$0xff] }
   0xc   :  { %v315_v37 = vld [vmem:[%s463_s8] sm:$0xff] }
   0xd   :  { %255 = vmatpush.bf16.msrb.mxu1 %v316_v36  ;;  %v322_v39 = vld [vmem:[%s462_s7] ss:$0 sm:$0xff] }
   0xe   :  { %212 = vmatpush.bf16.msrb.mxu0 %v313_v23  ;;  %v323_v48 = vld [vmem:[%s464_s9] ss:$0 sm:$0xff] }
  0x11   :  { %256 = vmatpush.bf16.msrb.mxu1 %v315_v37 }
  0x86   :  { %v80_v4 = vpop.f32.mrf.mxu0 }
  0x8e   :  { %v82_v5 = vpop.f32.mrf.mxu0 }
  0x8f   :  { %v85_v6 = vpack.c.bf16 %v82_v5, %v80_v4 }
  0x91   :  { %280 = vmatmul.msk.bf16.vlgmr.msra.gmra.mxu1 %vm91_vm2, %v85_v6 }
 0x10e   :  { %v108_v9 = vpop.f32.mrf.mxu1 }
 0x10f   :  { %v109_v11 = vadd.f32 %v320_v10, %v108_v9 }
 0x111   :  { %v115_v13 = vmul.f32 0.01, %v109_v11  ;;  %vm113_vm3 = vcmp.gt.f32.partialorder %v109_v11, 0.0 }
 0x113   :  { %v117_v16 = vsel %vm113_vm3, %v109_v11, %v115_v13 }
 0x116   :  { %v110_v12 = vpop.f32.mrf.mxu1 }
 0x117   :  { %v111_v14 = vadd.f32 %v320_v10, %v110_v12 }
 0x119   :  { %vm114_vm4 = vcmp.gt.f32.partialorder %v111_v14, 0.0  ;;  %v116_v15 = vmul.f32 0.01, %v111_v14 }
 0x11b   :  { %v118_v17 = vsel %vm114_vm4, %v111_v14, %v116_v15 }
 0x11c   :  { %v119_v18 = vpack.c.bf16 %v118_v17, %v117_v16 }
 0x11e   :  { %289 = vmatmul.msk.bf16.vlgmr.msra.gmra.mxu2 %vm136_vm5, %v119_v18 }
 0x1a1   :  { %v149_v19 = vpop.f32.mrf.mxu2 }
 0x1a9   :  { %v151_v20 = vpop.f32.mrf.mxu2 }
 0x1aa   :  { %v154_v21 = vpack.c.bf16 %v151_v20, %v149_v19 }
 0x1ac   :  { %166 = vmatpush.bf16.msra.mxu3 %v154_v21 }
 0x1af   :  { %290 = vmatmul.msk.bf16.vlgmr.msra.gmra.mxu3 %vm67_vm0, %v309_v1 }
 0x232   :  { %v168_v25 = vpop.f32.mrf.mxu3 }
 0x233   :  { %v169_v26 = vadd.f32 %v321_v24, %v168_v25 }
 0x235   :  { %v173_v27 = vadd.f32 %v169_v26, %v117_v16 }
 0x237   :  { %v177_v30 = vmul.f32 0.01, %v173_v27  ;;  %vm175_vm6 = vcmp.gt.f32.partialorder %v173_v27, 0.0 }
 0x239   :  { %v179_v33 = vsel %vm175_vm6, %v173_v27, %v177_v30 }
 0x23a   :  { %v170_v28 = vpop.f32.mrf.mxu3 }
 0x23b   :  { %v171_v29 = vadd.f32 %v321_v24, %v170_v28 }
 0x23d   :  { %v174_v31 = vadd.f32 %v171_v29, %v118_v17 }
 0x23f   :  { %vm176_vm7 = vcmp.gt.f32.partialorder %v174_v31, 0.0  ;;  %v178_v32 = vmul.f32 0.01, %v174_v31 }
 0x241   :  { %v180_v34 = vsel %vm176_vm7, %v174_v31, %v178_v32 }
 0x242   :  { %v181_v35 = vpack.c.bf16 %v180_v34, %v179_v33 }
 0x244   :  { %299 = vmatmul.msk.bf16.vlgmr.msrb.gmra.mxu0 %vm136_vm5, %v181_v35 }
 0x2c1   :  { %v214_v38 = vpop.f32.mrf.mxu0 }
 0x2c2   :  { %v215_v40 = vadd.f32 %v322_v39, %v214_v38 }
 0x2c4   :  { %v221_v42 = vmul.f32 0.01, %v215_v40  ;;  %vm219_vm8 = vcmp.gt.f32.partialorder %v215_v40, 0.0 }
 0x2c6   :  { %v223_v45 = vsel %vm219_vm8, %v215_v40, %v221_v42 }
 0x2c9   :  { %v216_v41 = vpop.f32.mrf.mxu0 }
 0x2ca   :  { %v217_v43 = vadd.f32 %v322_v39, %v216_v41 }
 0x2cc   :  { %vm220_vm9 = vcmp.gt.f32.partialorder %v217_v43, 0.0  ;;  %v222_v44 = vmul.f32 0.01, %v217_v43 }
 0x2ce   :  { %v224_v46 = vsel %vm220_vm9, %v217_v43, %v222_v44 }
 0x2cf   :  { %v225_v47 = vpack.c.bf16 %v224_v46, %v223_v45 }
 0x2d1   :  { %308 = vmatmul.msk.bf16.vlgmr.msrb.gmra.mxu1 %vm136_vm5, %v225_v47 }
 0x34e   :  { %v258_v49 = vpop.f32.mrf.mxu1 }
 0x34f   :  { %v259_v50 = vadd.f32 %v323_v48, %v258_v49 }
 0x351   :  { %264 = vst.msk [vmem:[%s465_s10] sm:$0xff] %vm263_vm10, %v259_v50 }
 0x356   :  { %v260_v51 = vpop.f32.mrf.mxu1 }
 0x357   :  { %v261_v52 = vadd.f32 %v323_v48, %v260_v51 }
 0x359   :  { %265 = vst.msk [vmem:[%s465_s10 + $0x8] sm:$0xff] %vm263_vm10, %v261_v52 }
 0x35a   :  { %270 = vsyncpa [#allocation3], 1 }

</bundles_post_ra>
